<compile_context>
chip_gen: v6e
topology: v6e:2x2x1
jax: 0.10.0
libtpu: 0.0.40
codegen_flags: <defaults>
</compile_context>

<pallas_src>
import jax
import jax.numpy as jnp
from jax import lax
from jax.experimental import pallas as pl
from jax.experimental.pallas import tpu as pltpu


# ---------------------------------------------------------------------------
# Fused kernel: conv (im2col matmul) + bias + ReLU -> VMEM feat -> both heads
# ---------------------------------------------------------------------------
def fused_actor_critic_kernel(p_ref, wc_ref, bc_ref, wh_ref, bh_ref,
                              probs_ref, val_ref, feat_sc):
    # p_ref:    (CK, B*HW)  im2col patches for the whole batch (CK = C*9, HW = H*W)
    # wc_ref:   (Cout, CK)  conv weight reshaped
    # bc_ref:   (Cout, 1)   conv bias
    # wh_ref:   (A+1, F)    [actor; critic] weights, native lane-dense layout
    # bh_ref:   (1, A+1)    [actor; critic] biases
    # probs_ref:(B, A)      softmax(actor) output
    # val_ref:  (B, 1)      critic output
    # feat_sc:  (B, F)      VMEM scratch holding flattened conv features
    B, F = feat_sc.shape
    Cout = wc_ref.shape[0]
    A = probs_ref.shape[1]
    HW = F // Cout

    # Conv + ReLU: one MXU matmul for the whole batch (B*HW lane-dense columns).
    co = jnp.dot(wc_ref[...], p_ref[...],
                 preferred_element_type=jnp.float32)          # (Cout, B*HW)
    co = jnp.maximum(co + bc_ref[...], 0.0)                   # bias + ReLU

    # Channel-major flatten (identical ordering to torch.nn.Flatten on the NCHW
    # conv output) into the (B, F) scratch. All slices are 256-lane aligned.
    for b in range(B):
        for c in range(Cout):
            feat_sc[b:b + 1, c * HW:(c + 1) * HW] = co[c:c + 1, b * HW:(b + 1) * HW]

    # Both heads in one matmul: (B, F) x (A+1, F)^T via dot_general contracting dim 1.
    heads = lax.dot_general(
        feat_sc[...], wh_ref[...],
        dimension_numbers=(((1,), (1,)), ((), ())),
        preferred_element_type=jnp.float32) + bh_ref[...]     # (B, A+1)

    logits = heads[:, :A]
    m = jnp.max(logits, axis=-1, keepdims=True)
    e = jnp.exp(logits - m)
    s = jnp.sum(e, axis=-1, keepdims=True)
    probs_ref[...] = (e / s).astype(probs_ref.dtype)
    val_ref[...] = heads[:, A:A + 1].astype(val_ref.dtype)


# ---------------------------------------------------------------------------
# Wrapper
# ---------------------------------------------------------------------------
def conv_actor_critic_forward(x, params):
    """x: (B, C, H, W) float32 -> (action_probs (B, A), value (B,))."""
    B, C, H, W = x.shape
    wc, bc = params["conv_w"], params["conv_b"]          # (Cout, C, 3, 3), (Cout,)
    wa, ba = params["actor_w"], params["actor_b"]        # (A, Cout*H*W), (A,)
    wv, bv = params["critic_w"], params["critic_b"]      # (1, Cout*H*W), (1,)
    Cout = wc.shape[0]
    A = wa.shape[0]
    HW = H * W
    CK = C * 9
    F = Cout * HW

    # --- glue: im2col for 3x3 / stride 1 / pad 1 conv -> (CK, B*HW) -------------
    xp = jnp.pad(x, ((0, 0), (0, 0), (1, 1), (1, 1)))
    patches = jnp.stack(
        [xp[:, :, ki:ki + H, kj:kj + W] for ki in range(3) for kj in range(3)],
        axis=2,
    )                                                     # (B, C, 9, H, W)
    patches = patches.reshape(B, CK, HW).transpose(1, 0, 2).reshape(CK, B * HW)

    wc_r = wc.reshape(Cout, CK)
    bc_r = bc.reshape(Cout, 1)
    # Heads: keep native lane-dense (rows, F) layout; stack actor + critic rows.
    wh = jnp.concatenate([wa, wv], axis=0)                # (A+1, F)
    bh = jnp.concatenate([ba, bv]).reshape(1, A + 1)      # (1, A+1)

    vmem = pl.BlockSpec(memory_space=pltpu.MemorySpace.VMEM)
    probs, value = pl.pallas_call(
        fused_actor_critic_kernel,
        out_shape=(jax.ShapeDtypeStruct((B, A), jnp.float32),
                   jax.ShapeDtypeStruct((B, 1), jnp.float32)),
        in_specs=[vmem, vmem, vmem, vmem, vmem],
        out_specs=(vmem, vmem),
        scratch_shapes=[pltpu.VMEM((B, F), jnp.float32)],
    )(patches, wc_r, bc_r, wh, bh)

    return probs, value[:, 0]                             # squeeze(-1) like PyTorch


# ---------------------------------------------------------------------------
# Pure-JAX reference (for correctness check)
# ---------------------------------------------------------------------------
def reference_forward(x, params):
    y = lax.conv_general_dilated(
        x, params["conv_w"], window_strides=(1, 1), padding=((1, 1), (1, 1)),
        dimension_numbers=("NCHW", "OIHW", "NCHW"),
        precision=lax.Precision.HIGHEST)
    y = jnp.maximum(y + params["conv_b"][None, :, None, None], 0.0)
    f = y.reshape(y.shape[0], -1)
    logits = jnp.dot(f, params["actor_w"].T,
                     precision=lax.Precision.HIGHEST) + params["actor_b"]
    probs = jax.nn.softmax(logits, axis=-1)
    value = (jnp.dot(f, params["critic_w"].T,
                     precision=lax.Precision.HIGHEST) + params["critic_b"])[:, 0]
    return probs, value


if __name__ == "__main__":
    # Shapes consistent with the module: batch=2, input_channels=4,
    # grid_size=16, output_dim=4 (snake actions), conv1=8.
    B, C, GRID, A, COUT = 2, 4, 16, 4, 8
    F = COUT * GRID * GRID

    key = jax.random.PRNGKey(0)
    kx, k1, k2, k3, k4, k5, k6 = jax.random.split(key, 7)
    x = jax.random.normal(kx, (B, C, GRID, GRID), jnp.float32)

    params = {
        "conv_w":   0.10 * jax.random.normal(k1, (COUT, C, 3, 3), jnp.float32),
        "conv_b":   0.10 * jax.random.normal(k2, (COUT,), jnp.float32),
        "actor_w":  0.02 * jax.random.normal(k3, (A, F), jnp.float32),
        "actor_b":  0.02 * jax.random.normal(k4, (A,), jnp.float32),
        "critic_w": 0.02 * jax.random.normal(k5, (1, F), jnp.float32),
        "critic_b": 0.02 * jax.random.normal(k6, (1,), jnp.float32),
    }

    probs, value = jax.jit(conv_actor_critic_forward)(x, params)
    jax.block_until_ready((probs, value))

    ref_probs, ref_value = reference_forward(x, params)
    assert probs.shape == (B, A) and value.shape == (B,)
    assert jnp.allclose(probs, ref_probs, atol=1e-3, rtol=1e-3)
    assert jnp.allclose(value, ref_value, atol=1e-3, rtol=1e-3)
    assert jnp.allclose(jnp.sum(probs, axis=-1), 1.0, atol=1e-4)

    print("KERNEL_OK")
</pallas_src>

<mosaic_0001>
module attributes {stable_mosaic.version = 11 : i64} {
  func.func @fused_actor_critic_kernel(%arg0: memref<36x512xf32, #tpu.memory_space<vmem>>, %arg1: memref<8x36xf32, #tpu.memory_space<vmem>>, %arg2: memref<8x1xf32, #tpu.memory_space<vmem>>, %arg3: memref<5x2048xf32, #tpu.memory_space<vmem>>, %arg4: memref<1x5xf32, #tpu.memory_space<vmem>>, %arg5: memref<2x4xf32, #tpu.memory_space<vmem>>, %arg6: memref<2x1xf32, #tpu.memory_space<vmem>>, %arg7: memref<2x2048xf32, #tpu.memory_space<vmem>>) attributes {dimension_semantics = [], scalar_prefetch = 0 : i64, scratch_operands = 1 : i64, tpu.core_type = #tpu.core_type<tc>} {
    %c0 = arith.constant 0 : index
    %c0_0 = arith.constant 0 : index
    %0 = vector.load %arg1[%c0, %c0_0] : memref<8x36xf32, #tpu.memory_space<vmem>>, vector<8x36xf32>
    %c0_1 = arith.constant 0 : index
    %c0_2 = arith.constant 0 : index
    %1 = vector.load %arg0[%c0_1, %c0_2] : memref<36x512xf32, #tpu.memory_space<vmem>>, vector<36x512xf32>
    %cst = arith.constant dense<0.000000e+00> : vector<8x512xf32>
    %2 = tpu.matmul %0, %1, %cst {dimension_numbers = #tpu.dot_dimension_numbers<[1], [0], [0], [1], [0, 0, 1, 1], [], []>} : vector<8x36xf32>, vector<36x512xf32>, vector<8x512xf32> -> vector<8x512xf32>
    %c0_3 = arith.constant 0 : index
    %c0_4 = arith.constant 0 : index
    %3 = vector.load %arg2[%c0_3, %c0_4] : memref<8x1xf32, #tpu.memory_space<vmem>>, vector<8x1xf32>
    %4 = vector.broadcast %3 : vector<8x1xf32> to vector<8x512xf32>
    %5 = arith.addf %2, %4 : vector<8x512xf32>
    %cst_5 = arith.constant 0.000000e+00 : f32
    %6 = vector.broadcast %cst_5 : f32 to vector<8x512xf32>
    %7 = arith.maximumf %5, %6 : vector<8x512xf32>
    %8 = vector.extract_strided_slice %7 {offsets = [0, 0], sizes = [1, 256], strides = [1, 1]} : vector<8x512xf32> to vector<1x256xf32>
    %c0_6 = arith.constant 0 : index
    %c0_7 = arith.constant 0 : index
    %9 = vector.load %arg7[%c0_6, %c0_7] : memref<2x2048xf32, #tpu.memory_space<vmem>>, vector<1x256xf32>
    tpu.vector_store %arg7[%c0_6, %c0_7], %8 {strides = array<i32>} : memref<2x2048xf32, #tpu.memory_space<vmem>>, vector<1x256xf32>,
    %10 = vector.extract_strided_slice %7 {offsets = [1, 0], sizes = [1, 256], strides = [1, 1]} : vector<8x512xf32> to vector<1x256xf32>
    %c0_8 = arith.constant 0 : index
    %c256 = arith.constant 256 : index
    %11 = vector.load %arg7[%c0_8, %c256] : memref<2x2048xf32, #tpu.memory_space<vmem>>, vector<1x256xf32>
    tpu.vector_store %arg7[%c0_8, %c256], %10 {strides = array<i32>} : memref<2x2048xf32, #tpu.memory_space<vmem>>, vector<1x256xf32>,
    %12 = vector.extract_strided_slice %7 {offsets = [2, 0], sizes = [1, 256], strides = [1, 1]} : vector<8x512xf32> to vector<1x256xf32>
    %c0_9 = arith.constant 0 : index
    %c512 = arith.constant 512 : index
    %13 = vector.load %arg7[%c0_9, %c512] : memref<2x2048xf32, #tpu.memory_space<vmem>>, vector<1x256xf32>
    tpu.vector_store %arg7[%c0_9, %c512], %12 {strides = array<i32>} : memref<2x2048xf32, #tpu.memory_space<vmem>>, vector<1x256xf32>,
    %14 = vector.extract_strided_slice %7 {offsets = [3, 0], sizes = [1, 256], strides = [1, 1]} : vector<8x512xf32> to vector<1x256xf32>
    %c0_10 = arith.constant 0 : index
    %c768 = arith.constant 768 : index
    %15 = vector.load %arg7[%c0_10, %c768] : memref<2x2048xf32, #tpu.memory_space<vmem>>, vector<1x256xf32>
    tpu.vector_store %arg7[%c0_10, %c768], %14 {strides = array<i32>} : memref<2x2048xf32, #tpu.memory_space<vmem>>, vector<1x256xf32>,
    %16 = vector.extract_strided_slice %7 {offsets = [4, 0], sizes = [1, 256], strides = [1, 1]} : vector<8x512xf32> to vector<1x256xf32>
    %c0_11 = arith.constant 0 : index
    %c1024 = arith.constant 1024 : index
    %17 = vector.load %arg7[%c0_11, %c1024] : memref<2x2048xf32, #tpu.memory_space<vmem>>, vector<1x256xf32>
    tpu.vector_store %arg7[%c0_11, %c1024], %16 {strides = array<i32>} : memref<2x2048xf32, #tpu.memory_space<vmem>>, vector<1x256xf32>,
    %18 = vector.extract_strided_slice %7 {offsets = [5, 0], sizes = [1, 256], strides = [1, 1]} : vector<8x512xf32> to vector<1x256xf32>
    %c0_12 = arith.constant 0 : index
    %c1280 = arith.constant 1280 : index
    %19 = vector.load %arg7[%c0_12, %c1280] : memref<2x2048xf32, #tpu.memory_space<vmem>>, vector<1x256xf32>
    tpu.vector_store %arg7[%c0_12, %c1280], %18 {strides = array<i32>} : memref<2x2048xf32, #tpu.memory_space<vmem>>, vector<1x256xf32>,
    %20 = vector.extract_strided_slice %7 {offsets = [6, 0], sizes = [1, 256], strides = [1, 1]} : vector<8x512xf32> to vector<1x256xf32>
    %c0_13 = arith.constant 0 : index
    %c1536 = arith.constant 1536 : index
    %21 = vector.load %arg7[%c0_13, %c1536] : memref<2x2048xf32, #tpu.memory_space<vmem>>, vector<1x256xf32>
    tpu.vector_store %arg7[%c0_13, %c1536], %20 {strides = array<i32>} : memref<2x2048xf32, #tpu.memory_space<vmem>>, vector<1x256xf32>,
    %22 = vector.extract_strided_slice %7 {offsets = [7, 0], sizes = [1, 256], strides = [1, 1]} : vector<8x512xf32> to vector<1x256xf32>
    %c0_14 = arith.constant 0 : index
    %c1792 = arith.constant 1792 : index
    %23 = vector.load %arg7[%c0_14, %c1792] : memref<2x2048xf32, #tpu.memory_space<vmem>>, vector<1x256xf32>
    tpu.vector_store %arg7[%c0_14, %c1792], %22 {strides = array<i32>} : memref<2x2048xf32, #tpu.memory_space<vmem>>, vector<1x256xf32>,
    %24 = vector.extract_strided_slice %7 {offsets = [0, 256], sizes = [1, 256], strides = [1, 1]} : vector<8x512xf32> to vector<1x256xf32>
    %c1 = arith.constant 1 : index
    %c0_15 = arith.constant 0 : index
    %25 = vector.load %arg7[%c1, %c0_15] : memref<2x2048xf32, #tpu.memory_space<vmem>>, vector<1x256xf32>
    tpu.vector_store %arg7[%c1, %c0_15], %24 {strides = array<i32>} : memref<2x2048xf32, #tpu.memory_space<vmem>>, vector<1x256xf32>,
    %26 = vector.extract_strided_slice %7 {offsets = [1, 256], sizes = [1, 256], strides = [1, 1]} : vector<8x512xf32> to vector<1x256xf32>
    %c1_16 = arith.constant 1 : index
    %c256_17 = arith.constant 256 : index
    %27 = vector.load %arg7[%c1_16, %c256_17] : memref<2x2048xf32, #tpu.memory_space<vmem>>, vector<1x256xf32>
    tpu.vector_store %arg7[%c1_16, %c256_17], %26 {strides = array<i32>} : memref<2x2048xf32, #tpu.memory_space<vmem>>, vector<1x256xf32>,
    %28 = vector.extract_strided_slice %7 {offsets = [2, 256], sizes = [1, 256], strides = [1, 1]} : vector<8x512xf32> to vector<1x256xf32>
    %c1_18 = arith.constant 1 : index
    %c512_19 = arith.constant 512 : index
    %29 = vector.load %arg7[%c1_18, %c512_19] : memref<2x2048xf32, #tpu.memory_space<vmem>>, vector<1x256xf32>
    tpu.vector_store %arg7[%c1_18, %c512_19], %28 {strides = array<i32>} : memref<2x2048xf32, #tpu.memory_space<vmem>>, vector<1x256xf32>,
    %30 = vector.extract_strided_slice %7 {offsets = [3, 256], sizes = [1, 256], strides = [1, 1]} : vector<8x512xf32> to vector<1x256xf32>
    %c1_20 = arith.constant 1 : index
    %c768_21 = arith.constant 768 : index
    %31 = vector.load %arg7[%c1_20, %c768_21] : memref<2x2048xf32, #tpu.memory_space<vmem>>, vector<1x256xf32>
    tpu.vector_store %arg7[%c1_20, %c768_21], %30 {strides = array<i32>} : memref<2x2048xf32, #tpu.memory_space<vmem>>, vector<1x256xf32>,
    %32 = vector.extract_strided_slice %7 {offsets = [4, 256], sizes = [1, 256], strides = [1, 1]} : vector<8x512xf32> to vector<1x256xf32>
    %c1_22 = arith.constant 1 : index
    %c1024_23 = arith.constant 1024 : index
    %33 = vector.load %arg7[%c1_22, %c1024_23] : memref<2x2048xf32, #tpu.memory_space<vmem>>, vector<1x256xf32>
    tpu.vector_store %arg7[%c1_22, %c1024_23], %32 {strides = array<i32>} : memref<2x2048xf32, #tpu.memory_space<vmem>>, vector<1x256xf32>,
    %34 = vector.extract_strided_slice %7 {offsets = [5, 256], sizes = [1, 256], strides = [1, 1]} : vector<8x512xf32> to vector<1x256xf32>
    %c1_24 = arith.constant 1 : index
    %c1280_25 = arith.constant 1280 : index
    %35 = vector.load %arg7[%c1_24, %c1280_25] : memref<2x2048xf32, #tpu.memory_space<vmem>>, vector<1x256xf32>
    tpu.vector_store %arg7[%c1_24, %c1280_25], %34 {strides = array<i32>} : memref<2x2048xf32, #tpu.memory_space<vmem>>, vector<1x256xf32>,
    %36 = vector.extract_strided_slice %7 {offsets = [6, 256], sizes = [1, 256], strides = [1, 1]} : vector<8x512xf32> to vector<1x256xf32>
    %c1_26 = arith.constant 1 : index
    %c1536_27 = arith.constant 1536 : index
    %37 = vector.load %arg7[%c1_26, %c1536_27] : memref<2x2048xf32, #tpu.memory_space<vmem>>, vector<1x256xf32>
    tpu.vector_store %arg7[%c1_26, %c1536_27], %36 {strides = array<i32>} : memref<2x2048xf32, #tpu.memory_space<vmem>>, vector<1x256xf32>,
    %38 = vector.extract_strided_slice %7 {offsets = [7, 256], sizes = [1, 256], strides = [1, 1]} : vector<8x512xf32> to vector<1x256xf32>
    %c1_28 = arith.constant 1 : index
    %c1792_29 = arith.constant 1792 : index
    %39 = vector.load %arg7[%c1_28, %c1792_29] : memref<2x2048xf32, #tpu.memory_space<vmem>>, vector<1x256xf32>
    tpu.vector_store %arg7[%c1_28, %c1792_29], %38 {strides = array<i32>} : memref<2x2048xf32, #tpu.memory_space<vmem>>, vector<1x256xf32>,
    %c0_30 = arith.constant 0 : index
    %c0_31 = arith.constant 0 : index
    %40 = vector.load %arg7[%c0_30, %c0_31] : memref<2x2048xf32, #tpu.memory_space<vmem>>, vector<2x2048xf32>
    %c0_32 = arith.constant 0 : index
    %c0_33 = arith.constant 0 : index
    %41 = vector.load %arg3[%c0_32, %c0_33] : memref<5x2048xf32, #tpu.memory_space<vmem>>, vector<5x2048xf32>
    %cst_34 = arith.constant dense<0.000000e+00> : vector<2x5xf32>
    %42 = tpu.matmul %40, %41, %cst_34 {dimension_numbers = #tpu.dot_dimension_numbers<[1], [1], [0], [0], [0, 0, 1, 0], [], []>} : vector<2x2048xf32>, vector<5x2048xf32>, vector<2x5xf32> -> vector<2x5xf32>
    %c0_35 = arith.constant 0 : index
    %c0_36 = arith.constant 0 : index
    %43 = vector.load %arg4[%c0_35, %c0_36] : memref<1x5xf32, #tpu.memory_space<vmem>>, vector<1x5xf32>
    %44 = vector.broadcast %43 : vector<1x5xf32> to vector<2x5xf32>
    %45 = arith.addf %42, %44 : vector<2x5xf32>
    %46 = vector.extract_strided_slice %45 {offsets = [0, 0], sizes = [2, 4], strides = [1, 1]} : vector<2x5xf32> to vector<2x4xf32>
    %cst_37 = arith.constant dense<0xFF800000> : vector<2xf32>
    %47 = vector.multi_reduction <maximumf>, %46, %cst_37 [1] : vector<2x4xf32> to vector<2xf32>
    %48 = vector.shape_cast %47 : vector<2xf32> to vector<2x1xf32>
    %49 = vector.broadcast %48 : vector<2x1xf32> to vector<2x4xf32>
    %50 = arith.subf %46, %49 : vector<2x4xf32>
    %51 = math.exp %50 : vector<2x4xf32>
    %cst_38 = arith.constant dense<0.000000e+00> : vector<2xf32>
    %52 = vector.multi_reduction <add>, %51, %cst_38 [1] : vector<2x4xf32> to vector<2xf32>
    %53 = vector.shape_cast %52 : vector<2xf32> to vector<2x1xf32>
    %54 = vector.broadcast %53 : vector<2x1xf32> to vector<2x4xf32>
    %55 = arith.divf %51, %54 : vector<2x4xf32>
    %c0_39 = arith.constant 0 : index
    %c0_40 = arith.constant 0 : index
    %56 = vector.load %arg5[%c0_39, %c0_40] : memref<2x4xf32, #tpu.memory_space<vmem>>, vector<2x4xf32>
    tpu.vector_store %arg5[%c0_39, %c0_40], %55 {strides = array<i32>} : memref<2x4xf32, #tpu.memory_space<vmem>>, vector<2x4xf32>,
    %57 = vector.extract_strided_slice %45 {offsets = [0, 4], sizes = [2, 1], strides = [1, 1]} : vector<2x5xf32> to vector<2x1xf32>
    %c0_41 = arith.constant 0 : index
    %c0_42 = arith.constant 0 : index
    %58 = vector.load %arg6[%c0_41, %c0_42] : memref<2x1xf32, #tpu.memory_space<vmem>>, vector<2x1xf32>
    tpu.vector_store %arg6[%c0_41, %c0_42], %57 {strides = array<i32>} : memref<2x1xf32, #tpu.memory_space<vmem>>, vector<2x1xf32>,
    return
  }
}

</mosaic_0001>

<bundles_post_ra>
// kernel: conv_actor_critic_forward.1
= control target key start
LH: loop header
LB: loop body
LE: loop exit
PB: predicated region body
PF: predicated region fallthrough
CT: control target
= control target key end

     0   :  { %vm54_vm0 = vcmask 1043456   ;;  %s1327_s0 = inlined_call_operand.vmem [shape: f32[36,512], index: 0, kind: input, shape index: {}]   ;;  %s1328_s1 = inlined_call_operand.vmem [shape: f32[8,36], index: 1, kind: input, shape index: {}]   ;;  %s1329_s2 = inlined_call_operand.vmem [shape: f32[8,1], index: 2, kind: input, shape index: {}]   ;;  %s1330_s3 = inlined_call_operand.vmem [shape: f32[5,2048], index: 3, kind: input, shape index: {}]   ;;  %s1331_s4 = inlined_call_operand.vmem [shape: f32[1,5], index: 4, kind: input, shape index: {}]   ;;  %s1332_s5 = inlined_call_operand.hbm [shape: f32[2,4], index: 5, kind: output, shape index: {0}]   ;;  %s1333_s6 = inlined_call_operand.vmem [shape: f32[2,1], index: 6, kind: output, shape index: {1}]  }
   0x1   :  { %v41_v0 = vld [vmem:[%s1327_s0 + $0x88] sm:$0xf]  ;;  %v43_v1 = vld [vmem:[%s1327_s0 + $0x98] sm:$0xf]  ;;  %v40_v3 = vld [vmem:[%s1327_s0 + $0x80] sm:$0xf] }
   0x2   :  { %v37_v2 = vld [vmem:[%s1327_s0 + $0x68] sm:$0xff]  ;;  %1080 = vmatprep.subr.msk.mxu0 %vm54_vm0, %v41_v0  ;;  %1083 = vmatprep.subr.msk.mxu1 %vm54_vm0, %v43_v1  ;;  %v42_v4 = vld [vmem:[%s1327_s0 + $0x90] sm:$0xf]  ;;  %v39_v5 = vld [vmem:[%s1327_s0 + $0x78] sm:$0xff] }
   0x3   :  { %1081 = vmatpush1.msk.msra.mxu0 %vm54_vm0, %v40_v3  ;;  %1084 = vmatpush1.msk.msra.mxu1 %vm54_vm0, %v42_v4  ;;  %v36_v6 = vld [vmem:[%s1327_s0 + $0x60] sm:$0xff]  ;;  %v38_v7 = vld [vmem:[%s1327_s0 + $0x70] sm:$0xff]  ;;  %v33_v8 = vld [vmem:[%s1327_s0 + $0x48] sm:$0xff] }
   0x4   :  { %91 = vmatprep.subr.mxu0 %v37_v2  ;;  %162 = vmatprep.subr.mxu1 %v39_v5  ;;  %v35_v9 = vld [vmem:[%s1327_s0 + $0x58] sm:$0xff]  ;;  %v32_v10 = vld [vmem:[%s1327_s0 + $0x40] sm:$0xff]  ;;  %v34_v11 = vld [vmem:[%s1327_s0 + $0x50] sm:$0xff] }
   0x5   :  { %92 = vmatpush1.msra.mxu0 %v36_v6  ;;  %163 = vmatpush1.msra.mxu1 %v38_v7  ;;  %v29_v12 = vld [vmem:[%s1327_s0 + $0x28] sm:$0xff]  ;;  %v31_v13 = vld [vmem:[%s1327_s0 + $0x38] sm:$0xff]  ;;  %v28_v14 = vld [vmem:[%s1327_s0 + $0x20] sm:$0xff] }
   0x6   :  { %93 = vmatprep.subr.mxu0 %v33_v8  ;;  %164 = vmatprep.subr.mxu1 %v35_v9  ;;  %v30_v15 = vld [vmem:[%s1327_s0 + $0x30] sm:$0xff]  ;;  %v25_v16 = vld [vmem:[%s1327_s0 + $0x8] sm:$0xff]  ;;  %v27_v17 = vld [vmem:[%s1327_s0 + $0x18] sm:$0xff] }
   0x7   :  { %94 = vmatpush1.msra.mxu0 %v32_v10  ;;  %165 = vmatpush1.msra.mxu1 %v34_v11  ;;  %v24_v18 = vld [vmem:[%s1327_s0] sm:$0xff] }
   0x8   :  { %95 = vmatprep.subr.mxu0 %v29_v12  ;;  %166 = vmatprep.subr.mxu1 %v31_v13 }
   0x9   :  { %12 = vsyncpa [#allocation4], 0  ;;  %96 = vmatpush1.msra.mxu0 %v28_v14  ;;  %167 = vmatpush1.msra.mxu1 %v30_v15  ;;  %v26_v19 = vld [vmem:[%s1327_s0 + $0x10] sm:$0xff]  ;;  %v23_v20 = vld [vmem:[%s1328_s1] sm:$0xff]  ;;  %vm50_vm1 = vcmask 293888   ;;  %v1124_v21 = vmov 0.0   ;;  %v219_v32 = vlaneseq }
   0xa   :  { %97 = vmatprep.subr.mxu0 %v25_v16  ;;  %168 = vmatprep.subr.mxu1 %v27_v17  ;;  %v44_v22 = vld [vmem:[%s1329_s2] sm:$0xff]  ;;  %v1125_v23 = vmov 0   ;;  %v373_v24 = vld [vmem:[%s1330_s3 + $0x8] sm:$0x1f]  ;;  %v375_v26 = vld [vmem:[%s1330_s3 + $0x18] sm:$0x1f] }
   0xb   :  { %98 = vmatpush1.msra.mxu0 %v24_v18  ;;  %131 = vmatprep.mubr.f32.mxu0 %v1124_v21  ;;  %v372_v25 = vld [vmem:[%s1330_s3] sm:$0x1f]  ;;  %v374_v27 = vld [vmem:[%s1330_s3 + $0x10] sm:$0x1f]  ;;  %v377_v28 = vld [vmem:[%s1330_s3 + $0x28] sm:$0x1f] }
   0xc   :  { %169 = vmatpush1.msra.mxu1 %v26_v19  ;;  %202 = vmatprep.mubr.f32.mxu1 %v1124_v21  ;;  %v379_v29 = vld [vmem:[%s1330_s3 + $0x38] sm:$0x1f]  ;;  %v1126_v30 = vmov 1966171168   ;;  %v220_v37 = vshrl.u32 %v219_v32, 7  ;;  %vm1249_vm2 = vcmp.lt.s32.totalorder %v219_v32, 256 }
   0xd   :  { %1082 = vmatmul.mubr.msk.f32.vlgmr.msra.gmra.mxu0 %vm50_vm1, %v23_v20  ;;  %1085 = vmatmul.mubr.msk.f32.vlgmr.msra.gmra.mxu1 %vm50_vm1, %v23_v20  ;;  %v217_v31 = vunpack.c.l.s4 %v1126_v30  ;;  %v1127_v58 = vmov 1983009808   ;;  %vm1043_vm3 = vcmask 25600   ;;  %vm1060_vm4 = vcmask 1024   ;;  %s1129_s22 = smov [#allocation3]  }
   0xe   :  { %1093 = vset.pattern.permute.xlu0 %v1125_v23  ;;  %513 = vmatprep.subr.mxu0 %v373_v24  ;;  %v401_v59 = vunpack.c.l.s4 %v1127_v58  ;;  %s1068_s23 = sshll.u32 %s1129_s22, 4  ;;  %s1069_s23 = int_to_ptr.vmem [resolvable:$true] %s1068_s23 }
   0xf   :  { %47 = vperm.xlu0 %1093, %v44_v22   ;;  %583 = vmatprep.subr.mxu1 %v375_v26  ;;  %v218_v36 = vunpack.c.0.s8 %v217_v31  ;;  %s1102_s24 = scalar_lea.vmem %s1069_s23, 32  ;;  %p1107_p1 = scmp.lt.s32.totalorder %s1069_s23, %s1069_s23 }
  0x10   :  { %514 = vmatpush1.xpose.msra.mxu0 %v372_v25  ;;  %584 = vmatpush1.xpose.msra.mxu1 %v374_v27  ;;  %v402_v16 = vunpack.c.0.s8 %v401_v59  ;;  %p1103_p0 = scmp.ne.s32.totalorder %s1069_s23, %s1102_s24  ;;  %p1108_p2 = scmp.lt.s32.totalorder %s1102_s24, %s1102_s24 }
  0x11   :  { %653 = vmatprep.subr.mxu0 %v377_v28  ;;  %723 = vmatprep.subr.mxu1 %v379_v29  ;;  %v221_v44 = vsub.s32 %v218_v36, %v220_v37  ;;  %v376_v28 = vld [vmem:[%s1330_s3 + $0x20] sm:$0x1f]  ;;  %v381_v36 = vld [vmem:[%s1330_s3 + $0x48] sm:$0x1f] }
  0x12   :  { %v405_v17 = vsub.s32 %v402_v16, %v220_v37  ;;  %p1109_p3 = por %p1108_p2, %p1107_p1 }
  0x14   :  { %p1110_p4 = pnand %p1109_p3, %p1103_p0 }
  0x8a   :  { %v48_v33 = vpop.permute.xlu0 %47 }
  0xcd   :  { %v133_v34 = vpop.f32.mrf.mxu0  ;;  %v204_v35 = vpop.f32.mrf.mxu1 }
  0xce   :  { %v134_v38 = vadd.f32 %v133_v34, %v48_v33  ;;  %v205_v39 = vadd.f32 %v204_v35, %v48_v33  ;;  %v378_v34 = vld [vmem:[%s1330_s3 + $0x30] sm:$0x1f] }
  0xcf   :  { %v135_v40 = vpop.f32.mrf.mxu0  ;;  %v206_v41 = vpop.f32.mrf.mxu1 }
  0xd0   :  { %v136_v42 = vadd.f32 %v135_v40, %v48_v33  ;;  %v207_v43 = vadd.f32 %v206_v41, %v48_v33  ;;  %v209_v45 = vmax.f32 %v134_v38, 0.0  ;;  %v211_v46 = vmax.f32 %v205_v39, 0.0  ;;  %v380_v39 = vld [vmem:[%s1330_s3 + $0x40] sm:$0x1f]  ;;  %v383_v41 = vld [vmem:[%s1330_s3 + $0x58] sm:$0x1f] }
  0xd2   :  { %v210_v47 = vmax.f32 %v136_v42, 0.0  ;;  %v212_v48 = vmax.f32 %v207_v43, 0.0  ;;  %v382_v43 = vld [vmem:[%s1330_s3 + $0x50] sm:$0x1f] }
  0xd4   :  { %v215_v49 = vcombine.low %v209_v45, %v210_v47  ;;  %v255_v50 = vcombine.high %v209_v45, %v210_v47  ;;  %v294_v51 = vcombine.low %v211_v46, %v212_v48  ;;  %v331_v52 = vcombine.high %v211_v46, %v212_v48  ;;  %v385_v45 = vld [vmem:[%s1330_s3 + $0x68] sm:$0x1f]  ;;  %v384_v47 = vld [vmem:[%s1330_s3 + $0x60] sm:$0x1f] }
  0xd6   :  { %v222_v53 = vrot.slane %v215_v49, %v221_v44  ;;  %v262_v54 = vrot.slane %v255_v50, %v221_v44  ;;  %v301_v55 = vrot.slane %v294_v51, %v221_v44  ;;  %v338_v56 = vrot.slane %v331_v52, %v221_v44  ;;  %v387_v49 = vld [vmem:[%s1330_s3 + $0x78] sm:$0x1f]  ;;  %v386_v50 = vld [vmem:[%s1330_s3 + $0x70] sm:$0x1f]  ;;  %v1086_v52 = vld [vmem:[%s1331_s4] ss:$0 sm:$0xff] }
  0xd7   :  { %s1128_s3 = smov 124  }
  0xd8   :  { %v229_v60 = vrot.slane %v222_v53, %v221_v44  ;;  %v236_v61 = vcombine.high %v222_v53, %v222_v53  ;;  %v269_v62 = vrot.slane %v262_v54, %v221_v44  ;;  %v273_v63 = vcombine.high %v262_v54, %v262_v54 }
  0xd9   :  { %v308_v0 = vrot.slane %v301_v55, %v221_v44  ;;  %v312_v1 = vcombine.high %v301_v55, %v301_v55  ;;  %v345_v2 = vrot.slane %v338_v56, %v221_v44  ;;  %v349_v3 = vcombine.high %v338_v56, %v338_v56 }
  0xda   :  { %235 = vst.msk [vmem:[#allocation2] ss:$2 sm:$0x3] %vm1249_vm2, %v229_v60  ;;  %v243_v4 = vrot.slane %v236_v61, %v221_v44  ;;  %v247_v5 = vcombine.high %v229_v60, %v229_v60  ;;  %272 = vst.msk [vmem:[#allocation2 + $0x10] ss:$2 sm:$0x3] %vm1249_vm2, %v269_v62  ;;  %v280_v6 = vrot.slane %v273_v63, %v221_v44 }
  0xdb   :  { %v284_v7 = vcombine.high %v269_v62, %v269_v62  ;;  %311 = vst.msk [vmem:[#allocation2 + $0x1] ss:$2 sm:$0x3] %vm1249_vm2, %v308_v0  ;;  %v319_v8 = vrot.slane %v312_v1, %v221_v44  ;;  %v323_v9 = vcombine.high %v308_v0, %v308_v0  ;;  %348 = vst.msk [vmem:[#allocation2 + $0x11] ss:$2 sm:$0x3] %vm1249_vm2, %v345_v2 }
  0xdc   :  { %v356_v10 = vrot.slane %v349_v3, %v221_v44  ;;  %v360_v11 = vcombine.high %v345_v2, %v345_v2  ;;  %246 = vst.msk [vmem:[#allocation2 + $0x4] ss:$2 sm:$0x3] %vm1249_vm2, %v243_v4  ;;  %250 = vst.msk [vmem:[#allocation2 + $0x8] ss:$2 sm:$0x3] %vm1249_vm2, %v247_v5  ;;  %v251_v12 = vcombine.high %v243_v4, %v243_v4 }
  0xdd   :  { %283 = vst.msk [vmem:[#allocation2 + $0x14] ss:$2 sm:$0x3] %vm1249_vm2, %v280_v6  ;;  %287 = vst.msk [vmem:[#allocation2 + $0x18] ss:$2 sm:$0x3] %vm1249_vm2, %v284_v7  ;;  %v288_v13 = vcombine.high %v280_v6, %v280_v6  ;;  %v327_v14 = vcombine.high %v319_v8, %v319_v8 }
  0xde   :  { %322 = vst.msk [vmem:[#allocation2 + $0x5] ss:$2 sm:$0x3] %vm1249_vm2, %v319_v8  ;;  %326 = vst.msk [vmem:[#allocation2 + $0x9] ss:$2 sm:$0x3] %vm1249_vm2, %v323_v9  ;;  %v364_v15 = vcombine.high %v356_v10, %v356_v10 }
  0xdf   :  { %359 = vst.msk [vmem:[#allocation2 + $0x15] ss:$2 sm:$0x3] %vm1249_vm2, %v356_v10  ;;  %363 = vst.msk [vmem:[#allocation2 + $0x19] ss:$2 sm:$0x3] %vm1249_vm2, %v360_v11 }
  0xe0   :  { %254 = vst.msk [vmem:[#allocation2 + $0xc] ss:$2 sm:$0x3] %vm1249_vm2, %v251_v12  ;;  %291 = vst.msk [vmem:[#allocation2 + $0x1c] ss:$2 sm:$0x3] %vm1249_vm2, %v288_v13 }
  0xe1   :  { %330 = vst.msk [vmem:[#allocation2 + $0xd] ss:$2 sm:$0x3] %vm1249_vm2, %v327_v14  ;;  %367 = vst.msk [vmem:[#allocation2 + $0x1d] ss:$2 sm:$0x3] %vm1249_vm2, %v364_v15 }
  0xe5   :  { %v368_v18 = vld [vmem:[#allocation2] sm:$0xff] }
  0xe6   :  { %v370_v19 = vld [vmem:[#allocation2 + $0x10] sm:$0xff]  ;;  %v406_v20 = vrot.slane %v368_v18, %v405_v17  ;;  %v399_v21 = vcombine.high %v368_v18, %v368_v18 }
  0xe7   :  { %v433_v23 = vcombine.high %v370_v19, %v370_v19  ;;  %v440_v33 = vrot.slane %v370_v19, %v405_v17 }
  0xe8   :  { %v369_v22 = vld [vmem:[#allocation2 + $0x8] sm:$0xff]  ;;  %v414_v24 = vcombine.high %v406_v20, %v406_v20  ;;  %v413_v25 = vrot.slane %v399_v21, %v405_v17  ;;  %v371_v29 = vld [vmem:[#allocation2 + $0x18] sm:$0xff] }
  0xe9   :  { %v423_v26 = vrot.slane %v369_v22, %v405_v17  ;;  %v416_v27 = vcombine.high %v369_v22, %v369_v22  ;;  %v447_v37 = vrot.slane %v433_v23, %v405_v17  ;;  %v450_v38 = vcombine.high %v371_v29, %v371_v29 }
  0xea   :  { %547 = vmatprep.mubr.f32.mxu0 %v414_v24  ;;  %v415_v30 = vcombine.high %v413_v25, %v413_v25  ;;  %v448_v40 = vcombine.high %v440_v33, %v440_v33  ;;  %v457_v42 = vrot.slane %v371_v29, %v405_v17 }
  0xeb   :  { %v431_v31 = vcombine.high %v423_v26, %v423_v26  ;;  %v430_v32 = vrot.slane %v416_v27, %v405_v17  ;;  %548 = vmatmul.mubr.f32.vlgmr.msra.gmra.mxu0 %v406_v20  ;;  %v449_v44 = vcombine.high %v447_v37, %v447_v37  ;;  %v464_v46 = vrot.slane %v450_v38, %v405_v17 }
  0xec   :  { %654 = vmatpush1.xpose.msra.mxu0 %v376_v28  ;;  %617 = vmatprep.mubr.f32.mxu1 %v415_v30  ;;  %v465_v48 = vcombine.high %v457_v42, %v457_v42 }
  0xed   :  { %v432_v35 = vcombine.high %v430_v32, %v430_v32  ;;  %687 = vmatprep.mubr.f32.mxu0 %v431_v31  ;;  %618 = vmatmul.mubr.f32.vlgmr.msra.gmra.mxu1 %v413_v25  ;;  %v466_v51 = vcombine.high %v464_v46, %v464_v46 }
  0xee   :  { %724 = vmatpush1.xpose.msra.mxu1 %v378_v34  ;;  %793 = vmatprep.subr.mxu0 %v381_v36 }
  0xef   :  { %757 = vmatprep.mubr.f32.mxu1 %v432_v35  ;;  %688 = vmatmul.mubr.f32.vlgmr.msra.gmra.mxu0 %v423_v26 }
  0xf0   :  { %794 = vmatpush1.xpose.msra.mxu0 %v380_v39  ;;  %827 = vmatprep.mubr.f32.mxu0 %v448_v40 }
  0xf1   :  { %863 = vmatprep.subr.mxu1 %v383_v41  ;;  %758 = vmatmul.mubr.f32.vlgmr.msra.gmra.mxu1 %v430_v32 }
  0xf2   :  { %864 = vmatpush1.xpose.msra.mxu1 %v382_v43  ;;  %897 = vmatprep.mubr.f32.mxu1 %v449_v44 }
  0xf3   :  { %933 = vmatprep.subr.mxu0 %v385_v45  ;;  %828 = vmatmul.mubr.f32.vlgmr.msra.gmra.mxu0 %v440_v33 }
  0xf4   :  { %934 = vmatpush1.xpose.msra.mxu0 %v384_v47  ;;  %967 = vmatprep.mubr.f32.mxu0 %v465_v48 }
  0xf5   :  { %1003 = vmatprep.subr.mxu1 %v387_v49  ;;  %898 = vmatmul.mubr.f32.vlgmr.msra.gmra.mxu1 %v447_v37 }
  0xf6   :  { %1004 = vmatpush1.xpose.msra.mxu1 %v386_v50  ;;  %1037 = vmatprep.mubr.f32.mxu1 %v466_v51 }
  0xf7   :  { %968 = vmatmul.mubr.f32.vlgmr.msra.gmra.mxu0 %v457_v42 }
  0xf9   :  { %1038 = vmatmul.mubr.f32.vlgmr.msra.gmra.mxu1 %v464_v46 }
 0x1ab   :  { %v549_v53 = vpop.f32.mrf.mxu0 }
 0x1ac   :  { %v550_v54 = vadd.f32 %v1086_v52, %v549_v53 }
 0x1ad   :  { %v551_v55 = vpop.f32.mrf.mxu0  ;;  %v619_v56 = vpop.f32.mrf.mxu1 }
 0x1ae   :  { %v620_v57 = vadd.f32 %v619_v56, %v550_v54 }
 0x1af   :  { %v621_v58 = vpop.f32.mrf.mxu1  ;;  %v689_v59 = vpop.f32.mrf.mxu0 }
 0x1b0   :  { %v690_v60 = vadd.f32 %v689_v59, %v620_v57 }
 0x1b1   :  { %v691_v61 = vpop.f32.mrf.mxu0  ;;  %v759_v62 = vpop.f32.mrf.mxu1 }
 0x1b2   :  { %v760_v63 = vadd.f32 %v759_v62, %v690_v60 }
 0x1b3   :  { %v761_v0 = vpop.f32.mrf.mxu1  ;;  %v829_v1 = vpop.f32.mrf.mxu0 }
 0x1b4   :  { %v830_v2 = vadd.f32 %v829_v1, %v760_v63 }
 0x1b5   :  { %v831_v3 = vpop.f32.mrf.mxu0  ;;  %v899_v4 = vpop.f32.mrf.mxu1 }
 0x1b6   :  { %v900_v5 = vadd.f32 %v899_v4, %v830_v2 }
 0x1b7   :  { %v901_v6 = vpop.f32.mrf.mxu1  ;;  %v969_v7 = vpop.f32.mrf.mxu0 }
 0x1b8   :  { %v970_v8 = vadd.f32 %v969_v7, %v900_v5 }
 0x1b9   :  { %v971_v9 = vpop.f32.mrf.mxu0  ;;  %v1039_v10 = vpop.f32.mrf.mxu1 }
 0x1ba   :  { %v1040_v11 = vadd.f32 %v1039_v10, %v970_v8 }
 0x1bb   :  { %v1041_v12 = vpop.f32.mrf.mxu1 }
 0x1bc   :  { %v1044_v13 = vsel %vm1043_vm3, %v1040_v11, -inf }
 0x1bd   :  { %1045 = vmax.xlane.f32.xlu0 %v1044_v13 }
 0x246   :  { %v1046_v14 = vpop.xlane.xlu0 %1045 }
 0x247   :  { %v1047_v15 = vsub.f32 %v1040_v11, %v1046_v14 }
 0x249   :  { %v1048_v16 = vmul.f32 1.442695, %v1047_v15 }
 0x24b   :  { %1098 = vpow2.f32 %v1048_v16 }
 0x258   :  { %v1099_v17 = vpop.eup %1098 }
 0x259   :  { %v1050_v18 = vsel %vm1043_vm3, %v1099_v17, 0.0 }
 0x25a   :  { %1051 = vadd.xlane.f32.xlu1 %v1050_v18 }
 0x26b   :  { %1057 = vrot.lane.b32.xlu1 %v1040_v11, %s1128_s3 }
 0x2e3   :  { %v1052_v19 = vpop.xlane.xlu1 %1051 }
 0x2e4   :  { %1100 = vrcp.f32 %v1052_v19 }
 0x2e7   :  { %v1058_v20 = vpop.permute.xlu1 %1057 }
 0x2e8   :  { %1061 = vst.msk [vmem:[%s1333_s6] sm:$0x3] %vm1060_vm4, %v1058_v20 }
 0x2f1   :  { %v1101_v21 = vpop.eup %1100 }
 0x2f2   :  { %v1054_v22 = vmul.f32 %v1101_v21, %v1099_v17 }
 0x2f4   :  { %1055 = vst.msk [vmem:[#allocation3] sm:$0x3] %vm1043_vm3, %v1054_v22 }
 0x2f5   :  { %1113 = shalt.err (!%p1110_p4)
}
 0x2f6   :  { %1071 = dma.vmem_to_hbm [thread:$0]  %s1069_s23, 32, %s1332_s5, [#allocation4]  }
 0x2f7   :  { %1122 = dma.done.wait [#allocation4], 32  }
 0x2f8   :  { %1123 = vsyncadd [#allocation4], 4294967264 }
 0x2f9   :  { %1079 = vsyncpa [#allocation4], 1 }

</bundles_post_ra>
